<compile_context>
chip_gen: v5e
topology: v5e:2x2
jax: 0.10.0
libtpu: 0.0.40
codegen_flags: <defaults>
</compile_context>

<pallas_src>
import jax
import jax.numpy as jnp
from jax.experimental import pallas as pl
from jax.experimental.pallas import tpu as pltpu


def _seq_pool_kernel(x_ref, w_ref, b_ref, o_ref):
    # x_ref: (TB, S, D) native dtype; w_ref: (1, D); b_ref: (1,) in SMEM; o_ref: (TB, D)
    x = x_ref[...]                                   # keep native dtype (no f32 copy of the slab)
    w = w_ref[...].astype(x.dtype)                   # (1, D) row, broadcasts against (TB, S, D)
    bias = b_ref[0].astype(jnp.float32)              # scalar from SMEM

    # Attention scores: VPU multiply + lane reduce over D, f32 accumulation. (TB, S)
    scores = jnp.sum((x * w).astype(jnp.float32), axis=-1) + bias

    # Numerically-stable softmax over the sequence axis (torch dim=1).
    m = jnp.max(scores, axis=-1, keepdims=True)      # (TB, 1)
    p = jnp.exp(scores - m)                          # (TB, S)
    denom = jnp.sum(p, axis=-1, keepdims=True)       # (TB, 1)
    attn = p * pl.reciprocal(denom, approx=True)     # (TB, S), reciprocal on the EUP slot

    # Weighted representation: sum_s attn[b, s] * x[b, s, :]  -> (TB, D)
    attn_b = attn[:, :, None].astype(x.dtype)        # cast attn down before the weighted sum
    pooled = jnp.sum((x * attn_b).astype(jnp.float32), axis=1)
    o_ref[...] = pooled.astype(o_ref.dtype)


def _pick_block_b(B, S, D, itemsize, sublane):
    """Largest batch tile (multiple of `sublane`) with ~8 MiB x-tile, >=2 grid steps if possible."""
    budget = 8 * 1024 * 1024                          # double-buffered -> ~16 MiB << 64 MiB (v7x)
    tb = max(sublane, (budget // max(1, S * D * itemsize)) // sublane * sublane)
    tb_cap = -(-B // sublane) * sublane               # never tile past the (padded) batch
    tb = min(tb, tb_cap)
    if tb == tb_cap and tb_cap >= 2 * sublane:
        # Split into >= 2 grid steps so both v7x TensorCores get work.
        tb = max(sublane, (tb_cap // 2) // sublane * sublane)
    return int(tb)


def sequence_pooling(x, weight, bias, *, block_b=None):
    """x: (B, S, D); weight: (1, D) / (D, 1) / (D,); bias: scalar or (1,). Returns (B, D)."""
    B, S, D = x.shape
    w_row = jnp.reshape(weight, (1, D))               # (1, D) row layout (lane-dense)
    b_smem = jnp.reshape(bias, (1,)).astype(jnp.float32)

    itemsize = jnp.dtype(x.dtype).itemsize
    sublane = {4: 8, 2: 16, 1: 32}.get(itemsize, 8)   # sublane tile multiple per dtype width
    if block_b is None:
        block_b = _pick_block_b(B, S, D, itemsize, sublane)

    Bp = -(-B // block_b) * block_b
    if Bp != B:
        # Pad the batch to a block multiple; padded rows see all-zero x, give a
        # uniform (finite) softmax and zero pooled output, and are sliced off below.
        x = jnp.pad(x, ((0, Bp - B), (0, 0), (0, 0)))

    # Explicit scoped-VMEM budget: double-buffered x tile + output tiles + slack,
    # capped at 64 MiB so it also fits v7x (64 MiB VMEM per TensorCore).
    needed = 2 * block_b * S * D * itemsize + 2 * block_b * D * itemsize + (4 << 20)
    vmem_limit = int(min(64 << 20, max(32 << 20, needed)))

    out = pl.pallas_call(
        _seq_pool_kernel,
        out_shape=jax.ShapeDtypeStruct((Bp, D), x.dtype),
        grid_spec=pltpu.PrefetchScalarGridSpec(
            num_scalar_prefetch=0,
            grid=(Bp // block_b,),
            in_specs=[
                pl.BlockSpec((block_b, S, D), lambda b: (b, 0, 0)),      # x, TB batches per step
                pl.BlockSpec((1, D), lambda b: (0, 0)),                  # attention weight row
                pl.BlockSpec(memory_space=pltpu.MemorySpace.SMEM),       # bias scalar in SMEM
            ],
            out_specs=pl.BlockSpec((block_b, D), lambda b: (b, 0)),
        ),
        compiler_params=pltpu.CompilerParams(
            dimension_semantics=("parallel",),
            vmem_limit_bytes=vmem_limit,
        ),
    )(x, w_row, b_smem)

    return out[:B] if Bp != B else out


def reference_sequence_pooling(x, weight, bias):
    xf = x.astype(jnp.float32)
    wf = jnp.reshape(weight, (-1,)).astype(jnp.float32)
    bf = jnp.reshape(bias, (1,)).astype(jnp.float32)
    scores = jnp.einsum("bsd,d->bs", xf, wf,
                        precision=jax.lax.Precision.HIGHEST) + bf[0]     # (B, S)
    attn = jax.nn.softmax(scores, axis=1)                                # softmax over sequence
    pooled = jnp.einsum("bs,bsd->bd", attn, xf,
                        precision=jax.lax.Precision.HIGHEST)             # (B, D)
    return pooled.astype(x.dtype)


if __name__ == "__main__":
    # B not a multiple of the batch tile, full-lane D, non-power-of-two S.
    B, S, D = 12, 10, 128
    key = jax.random.PRNGKey(0)
    kx, kw = jax.random.split(key)

    x = jax.random.normal(kx, (B, S, D), dtype=jnp.float32)
    # Deterministic init matching nn.init.trunc_normal_(std=0.1) + zero bias.
    weight = 0.1 * jax.random.truncated_normal(kw, -2.0, 2.0, (1, D), dtype=jnp.float32)
    bias = jnp.zeros((1,), dtype=jnp.float32)

    out = jax.block_until_ready(sequence_pooling(x, weight, bias))
    ref = reference_sequence_pooling(x, weight, bias)
    assert out.shape == (B, D), out.shape
    # Tolerance accounts for the EUP approximate reciprocal (uniform per-row scale).
    assert jnp.allclose(out, ref, atol=2e-3, rtol=2e-2), \
        float(jnp.max(jnp.abs(out - ref)))

    # bf16 path: native-dtype tiles inside the kernel, f32 softmax state only.
    xb = x.astype(jnp.bfloat16)
    wb = weight.astype(jnp.bfloat16)
    outb = jax.block_until_ready(sequence_pooling(xb, wb, bias))
    refb = reference_sequence_pooling(xb, wb, bias)
    assert outb.shape == (B, D) and outb.dtype == jnp.bfloat16
    assert jnp.allclose(outb.astype(jnp.float32), refb.astype(jnp.float32),
                        atol=6e-2, rtol=6e-2), "bf16 mismatch vs reference"

    print("KERNEL_OK")
</pallas_src>

<mosaic_0001>
module attributes {stable_mosaic.version = 11 : i64} {
  func.func @_seq_pool_kernel(%arg0: i32, %arg1: memref<8x10x128xf32, #tpu.memory_space<vmem>>, %arg2: memref<1x128xf32, #tpu.memory_space<vmem>>, %arg3: memref<1xf32, #tpu.memory_space<smem>>, %arg4: memref<8x128xf32, #tpu.memory_space<vmem>>) attributes {dimension_semantics = [#tpu.dimension_semantics<parallel>], iteration_bounds = array<i64: 2>, scalar_prefetch = 0 : i64, scratch_operands = 0 : i64, tpu.core_type = #tpu.core_type<tc>, window_params = [{transform_indices = @transform_0, window_bounds = array<i64: 8, 10, 128>}, {pipeline_mode = #tpu.pipeline_mode<synchronous>, transform_indices = @transform_1, window_bounds = array<i64: 1, 128>}, {transform_indices = @transform_2, window_bounds = array<i64: 1>}, {transform_indices = @transform_3, window_bounds = array<i64: 8, 128>}]} {
    %c0 = arith.constant 0 : index
    %c0_0 = arith.constant 0 : index
    %c0_1 = arith.constant 0 : index
    %0 = vector.load %arg1[%c0, %c0_0, %c0_1] : memref<8x10x128xf32, #tpu.memory_space<vmem>>, vector<8x10x128xf32>
    %c0_2 = arith.constant 0 : index
    %c0_3 = arith.constant 0 : index
    %1 = vector.load %arg2[%c0_2, %c0_3] : memref<1x128xf32, #tpu.memory_space<vmem>>, vector<1x128xf32>
    %c0_4 = arith.constant 0 : index
    %2 = memref.load %arg3[%c0_4] : memref<1xf32, #tpu.memory_space<smem>>
    %3 = vector.shape_cast %1 : vector<1x128xf32> to vector<1x1x128xf32>
    %4 = vector.broadcast %3 : vector<1x1x128xf32> to vector<8x10x128xf32>
    %5 = arith.mulf %0, %4 : vector<8x10x128xf32>
    %cst = arith.constant dense<0.000000e+00> : vector<8x10xf32>
    %6 = vector.multi_reduction <add>, %5, %cst [2] : vector<8x10x128xf32> to vector<8x10xf32>
    %7 = vector.broadcast %2 : f32 to vector<8x10xf32>
    %8 = arith.addf %6, %7 : vector<8x10xf32>
    %cst_5 = arith.constant dense<0xFF800000> : vector<8xf32>
    %9 = vector.multi_reduction <maximumf>, %8, %cst_5 [1] : vector<8x10xf32> to vector<8xf32>
    %10 = vector.shape_cast %9 : vector<8xf32> to vector<8x1xf32>
    %11 = vector.broadcast %10 : vector<8x1xf32> to vector<8x10xf32>
    %12 = arith.subf %8, %11 : vector<8x10xf32>
    %13 = math.exp %12 : vector<8x10xf32>
    %cst_6 = arith.constant dense<0.000000e+00> : vector<8xf32>
    %14 = vector.multi_reduction <add>, %13, %cst_6 [1] : vector<8x10xf32> to vector<8xf32>
    %15 = vector.shape_cast %14 : vector<8xf32> to vector<8x1xf32>
    %16 = tpu.reciprocal %15 {approx = true} : vector<8x1xf32> -> vector<8x1xf32>
    %17 = vector.broadcast %16 : vector<8x1xf32> to vector<8x10xf32>
    %18 = arith.mulf %13, %17 : vector<8x10xf32>
    %19 = vector.shape_cast %18 : vector<8x10xf32> to vector<8x10x1xf32>
    %20 = vector.broadcast %19 : vector<8x10x1xf32> to vector<8x10x128xf32>
    %21 = arith.mulf %0, %20 : vector<8x10x128xf32>
    %cst_7 = arith.constant dense<0.000000e+00> : vector<8x128xf32>
    %22 = vector.multi_reduction <add>, %21, %cst_7 [1] : vector<8x10x128xf32> to vector<8x128xf32>
    %c0_8 = arith.constant 0 : index
    %c0_9 = arith.constant 0 : index
    %23 = vector.load %arg4[%c0_8, %c0_9] : memref<8x128xf32, #tpu.memory_space<vmem>>, vector<8x128xf32>
    tpu.vector_store %arg4[%c0_8, %c0_9], %22 {strides = array<i32>} : memref<8x128xf32, #tpu.memory_space<vmem>>, vector<8x128xf32>,
    return
  }
  func.func @transform_0(%arg0: i32) -> (i32, i32, i32) {
    %c0_i32 = arith.constant 0 : i32
    %c0_i32_0 = arith.constant 0 : i32
    %c0_i32_1 = arith.constant 0 : i32
    return %arg0, %c0_i32, %c0_i32_0 : i32, i32, i32
  }
  func.func @transform_1(%arg0: i32) -> (i32, i32) {
    %c0_i32 = arith.constant 0 : i32
    %c0_i32_0 = arith.constant 0 : i32
    %c0_i32_1 = arith.constant 0 : i32
    return %c0_i32, %c0_i32_0 : i32, i32
  }
  func.func @transform_2(%arg0: i32) -> i32 {
    %c0_i32 = arith.constant 0 : i32
    %c0_i32_0 = arith.constant 0 : i32
    return %c0_i32 : i32
  }
  func.func @transform_3(%arg0: i32) -> (i32, i32) {
    %c0_i32 = arith.constant 0 : i32
    %c0_i32_0 = arith.constant 0 : i32
    return %arg0, %c0_i32 : i32, i32
  }
}

</mosaic_0001>

<bundles_post_ra>
// kernel: tpu_custom_call.1
= control target key start
LH: loop header
LB: loop body
LE: loop exit
PB: predicated region body
PF: predicated region fallthrough
CT: control target
= control target key end

     0   :  { %s1365_s0 = inlined_call_operand.vmem [shape: f32[16,10,128], index: 0, kind: input, shape index: {}]   ;;  %s1366_s1 = inlined_call_operand.vmem [shape: f32[1,128], index: 1, kind: input, shape index: {}]   ;;  %s1367_s2 = inlined_call_operand.<no memory space> [shape: f32[1], index: 2, kind: input, shape index: {}]   ;;  %s1368_s3 = inlined_call_operand.hbm [shape: f32[16,128], index: 3, kind: output, shape index: {}]  }
   0x1   :  { %8 = sst [smem:[#allocation2]] %s1367_s2 }
   0x2   :  { %9 = vsyncpa [#allocation4], 0 }
   0x3   :  { %11 = vsyncpa [#allocation4 + $0x1], 0  ;;  %s962_s14 = smov 0   ;;  %s964_s15 = smov 0  }
   0x4   :  { %s966_s16 = smov 0   ;;  %s968_s17 = smov 0  }
   0x5 LB: > { %s782_s2 = sadd.s32 4294967295, %s936_s17   ;;  %s783_s18 = sadd.s32 4294967294, %s936_s17   ;;  %s936_s17 = sphi %s968_s17, %s1374_s17   ;;  %s932_s16 = sphi %s966_s16, %s1373_s16   ;;  %s928_s15 = sphi %s964_s15, %s1372_s15   ;;  %s924_s14 = sphi %s962_s14, %s1371_s14  }
   0x6   : > { %s985_s19 = sadd.s32 1, %s936_s17   ;;  %s92_s20 = sadd.s32 1, %s932_s16 }
   0x7   : > { %s89_s21 = ssub.s32 %s936_s17, %s985_s19  ;;  %p102_p0 = scmp.ne.s32.totalorder %s932_s16, %s928_s15 }
   0x8   : > { %p90_p1 = scmp.eq.s32.totalorder %s89_s21, 0  ;;  %p103_p2 = scmp.eq.s32.totalorder %s782_s2, 1 }
   0x9   : > { %p108_p3 = scmp.ne.s32.totalorder %s928_s15, %s924_s14  ;;  %p109_p4 = scmp.eq.s32.totalorder %s783_s18, 1 }
   0xa   : > { %s995_s22 = scalar_select %p90_p1, %s932_s16, %s92_s20  }
   0xb   : > { %p997_p5 = por %p103_p2, %p102_p0  ;;  %p1001_p6 = por %p109_p4, %p108_p3 }
   0xc   : > { %p786_p7 = scmp.ge.s32.totalorder %s936_s17, 1  ;;  %p143_p8 = scmp.lt.s32.totalorder %s936_s17, 3 }
   0xe   : > { %p144_p9 = pnand %p786_p7, %p143_p8 }
   0xf   : > { %s1007_s25 = sshll.u32 (!%p144_p9), %s782_s2, 3  ;;  %s192_s6 = sld [smem:[#allocation2]] (!%p144_p9) }
  0x10   : > { %147 = sbr.rel (%p144_p9) target bundleno = 793 (0x319), region = 32  ;;  %p169_p10 = scmp.lt.s32.totalorder (!%p144_p9), %s1007_s25, 15 }
  0x11   : > { %s165_s7 = sand.u32 (!%p144_p9), 1, %s928_s15   ;;  %s719_s11 = scalar_lea.hbm (!%p144_p9), %s1368_s3, %s1007_s25 }
  0x12   : > { %s787_s8 = sshll.u32 (!%p144_p9), %s165_s7, 3  ;;  %s723_s2 = sshll.u32 (!%p144_p9), %s719_s11, 4  ;;  %s724_s2 = int_to_ptr.hbm [resolvable:$true] %s723_s2 }
  0x13   : > { %s167_s12 = scalar_lea.vmem (!%p144_p9), [#allocation3], %s787_s8  ;;  %s709_s18 = scalar_lea.sflag (!%p144_p9), [#allocation4], %s165_s7 }
  0x14   : > { %s721_s13 = sshll.u32 (!%p144_p9), %s167_s12, 4  ;;  %s888_s20 = sshra.s32 (!%p144_p9), %s724_s2, 4  ;;  %s722_s13 = int_to_ptr.vmem [resolvable:$true] %s721_s13  ;;  %s889_s20 = int_to_ptr.hbm [resolvable:$true] %s888_s20 }
  0x15   : > { %s170_s26 = scalar_select %p169_p10, %s1007_s25, 15  ;;  %v839_v0 = vld [vmem:[%s1366_s1] ss:$0 sm:$0xff]  ;;  %vm214_vm0 = vcmask 1041408   ;;  %v286_v50 = vlaneseq  ;;  %v253_v52 = vstv %s192_s6  ;;  %vm291_vm1 = vcmask 130112  }
  0x16   : > { %vm314_vm2 = vcmask 1041409   ;;  %vm316_vm3 = vcmask 1042434   ;;  %vm318_vm4 = vcmask 1043459   ;;  %vm320_vm5 = vcmask 1044484   ;;  %s890_s21 = scalar_lea.hbm %s889_s20, 8  ;;  %s894_s27 = scalar_lea.hbm %s1368_s3, 16 }
  0x17   : > { %s795_s29 = sshll.u32 %s170_s26, 4  ;;  %v1091_v51 = vand.u32 127, %v286_v50  ;;  %vm322_vm6 = vcmask 1045509   ;;  %vm324_vm7 = vcmask 1046534   ;;  %vm326_vm8 = vcmask 1047559   ;;  %p891_p11 = scmp.ne.s32.totalorder %s889_s20, %s890_s21 }
  0x18   : > { %s1017_s5 = scalar_lea.vmem %s1365_s0, %s795_s29  ;;  %vm329_vm9 = vcmask 80896   ;;  %p895_p0 = scmp.lt.s32.totalorder %s889_s20, %s1368_s3 }
  0x19   : > { %v1020_v1 = vld [vmem:[%s1017_s5 + $0x20] sm:$0xff]  ;;  %v1023_v2 = vld [vmem:[%s1017_s5 + $0x10] sm:$0xff]  ;;  %v1032_v7 = vld [vmem:[%s1017_s5 + $0x28] sm:$0x3]  ;;  %v1096_v55 = vadd.s32 4294967288, %v1091_v51  ;;  %p892_p12 = pnand %p891_p11, %p997_p5  ;;  %p896_p1 = scmp.lt.s32.totalorder %s894_s27, %s890_s21 }
  0x1a   : > { %v1026_v3 = vld [vmem:[%s1017_s5] sm:$0xff]  ;;  %v200_v4 = vmul.f32 %v839_v0, %v1020_v1  ;;  %v198_v5 = vmul.f32 %v839_v0, %v1023_v2  ;;  %v1035_v8 = vld [vmem:[%s1017_s5 + $0x18] sm:$0x3]  ;;  %v1038_v9 = vld [vmem:[%s1017_s5 + $0x8] sm:$0x3]  ;;  %v201_v10 = vmul.f32 %v839_v0, %v1032_v7 }
  0x1b   : > { %v196_v6 = vmul.f32 %v839_v0, %v1026_v3  ;;  %v199_v11 = vmul.f32 %v839_v0, %v1035_v8  ;;  %v197_v12 = vmul.f32 %v839_v0, %v1038_v9  ;;  %v1047_v16 = vld [vmem:[%s1017_s5 + $0x38] sm:$0x3]  ;;  %v1051_v18 = vld [vmem:[%s1017_s5 + $0x40] sm:$0xff]  ;;  %v1054_v19 = vld [vmem:[%s1017_s5 + $0x30] sm:$0xff]  ;;  %p893_p13 = pneg %p892_p12  ;;  %p897_p2 = por %p896_p1, %p895_p0 }
  0x1c   : > { %223 = vadd.xlane.f32.xlu2 %v200_v4  ;;  %218 = vadd.xlane.f32.xlu1 %v198_v5  ;;  %v225_v13 = vsel %vm214_vm0, %v201_v10, 0.0  ;;  %v203_v17 = vmul.f32 %v839_v0, %v1047_v16  ;;  %v204_v20 = vmul.f32 %v839_v0, %v1051_v18  ;;  %v202_v22 = vmul.f32 %v839_v0, %v1054_v19  ;;  %v1060_v23 = vld [vmem:[%s1017_s5 + $0x58] sm:$0x3]  ;;  %v1063_v24 = vld [vmem:[%s1017_s5 + $0x48] sm:$0x3]  ;;  %v1066_v25 = vld [vmem:[%s1017_s5 + $0x50] sm:$0xff] }
  0x1d   : > { %212 = vadd.xlane.f32.xlu0 %v196_v6  ;;  %v220_v14 = vsel %vm214_vm0, %v199_v11, 0.0  ;;  %v215_v15 = vsel %vm214_vm0, %v197_v12, 0.0  ;;  %v207_v26 = vmul.f32 %v839_v0, %v1060_v23  ;;  %v205_v27 = vmul.f32 %v839_v0, %v1063_v24  ;;  %v1074_v31 = vld [vmem:[%s1017_s5 + $0x68] sm:$0x3]  ;;  %v1078_v33 = vld [vmem:[%s1017_s5 + $0x70] sm:$0xff]  ;;  %v1081_v34 = vld [vmem:[%s1017_s5 + $0x60] sm:$0xff]  ;;  %p898_p3 = pnand %p897_p2, %p893_p13 }
  0x1e   : > { %v230_v21 = vsel %vm214_vm0, %v203_v17, 0.0  ;;  %v206_v28 = vmul.f32 %v839_v0, %v1066_v25  ;;  %v209_v32 = vmul.f32 %v839_v0, %v1074_v31  ;;  %v210_v35 = vmul.f32 %v839_v0, %v1078_v33  ;;  %v1087_v38 = vld [vmem:[%s1017_s5 + $0x78] sm:$0x3] }
  0x1f   : > { %v240_v29 = vsel %vm214_vm0, %v207_v26, 0.0  ;;  %v235_v30 = vsel %vm214_vm0, %v205_v27, 0.0  ;;  %v208_v37 = vmul.f32 %v839_v0, %v1081_v34  ;;  %v211_v39 = vmul.f32 %v839_v0, %v1087_v38 }
  0x20   : > { %v245_v36 = vsel %vm214_vm0, %v209_v32, 0.0 }
  0x21   : > { %v250_v40 = vsel %vm214_vm0, %v211_v39, 0.0 }
  0x24   : > { %226 = vadd.xlane.f32.xlu2 %v225_v13  ;;  %221 = vadd.xlane.f32.xlu1 %v220_v14 }
  0x25   : > { %216 = vadd.xlane.f32.xlu0 %v215_v15 }
  0x2c   : > { %231 = vadd.xlane.f32.xlu1 %v230_v21  ;;  %233 = vadd.xlane.f32.xlu2 %v204_v20 }
  0x2d   : > { %228 = vadd.xlane.f32.xlu0 %v202_v22 }
  0x34   : > { %238 = vadd.xlane.f32.xlu1 %v206_v28  ;;  %241 = vadd.xlane.f32.xlu2 %v240_v29 }
  0x35   : > { %236 = vadd.xlane.f32.xlu0 %v235_v30 }
  0x3c   : > { %246 = vadd.xlane.f32.xlu1 %v245_v36  ;;  %248 = vadd.xlane.f32.xlu2 %v210_v35 }
  0x3d   : > { %243 = vadd.xlane.f32.xlu0 %v208_v37 }
  0x45   : > { %251 = vadd.xlane.f32.xlu0 %v250_v40 }
  0x8f   : > { %v224_v41 = vpop.xlane.xlu2 %223  ;;  %v219_v42 = vpop.xlane.xlu1 %218 }
  0x90   : > { %v213_v43 = vpop.xlane.xlu0 %212  ;;  %v1093_v54 = vadd.f32 %v253_v52, %v219_v42  ;;  %v1104_v61 = vadd.f32 %v253_v52, %v224_v41 }
  0x91   : > { %v1102_v59 = vadd.f32 %v253_v52, %v213_v43 }
  0x92   : > { %v293_v62 = vperm.slane %v1093_v54, %v1091_v51  ;;  %v296_v14 = vperm.slane %v1104_v61, %v1091_v51 }
  0x93   : > { %v288_v10 = vperm.slane %v1102_v59, %v1091_v51 }
  0x97   : > { %v227_v44 = vpop.xlane.xlu2 %226  ;;  %v222_v45 = vpop.xlane.xlu1 %221 }
  0x98   : > { %v217_v46 = vpop.xlane.xlu0 %216  ;;  %v1098_v56 = vadd.f32 %v253_v52, %v222_v45  ;;  %v1108_v63 = vadd.f32 %v253_v52, %v227_v44 }
  0x99   : > { %v1100_v57 = vadd.f32 %v253_v52, %v217_v46 }
  0x9a   : > { %v294_v0 = vperm.slane %v1098_v56, %v1096_v55  ;;  %v297_v15 = vperm.slane %v1108_v63, %v1096_v55 }
  0x9b   : > { %v290_v4 = vperm.slane %v1100_v57, %v1096_v55 }
  0x9c   : > { %v295_v17 = vsel %vm291_vm1, %v294_v0, %v293_v62  ;;  %v298_v37 = vsel %vm291_vm1, %v297_v15, %v296_v14  ;;  %v938_v15 = vmov 0  }
  0x9d   : > { %v292_v20 = vsel %vm291_vm1, %v290_v4, %v288_v10  ;;  %838 = vset.pattern.permute.xlu1 %v938_v15  ;;  %837 = vset.pattern.permute.xlu0 %v938_v15 }
  0x9e   : > { %v315_v39 = vsel %vm314_vm2, %v295_v17, %v292_v20  ;;  %836 = vset.pattern.permute.xlu2 %v938_v15 }
  0x9f   : > { %v232_v47 = vpop.xlane.xlu1 %231  ;;  %v234_v49 = vpop.xlane.xlu2 %233 }
  0xa0   : > { %v229_v48 = vpop.xlane.xlu0 %228  ;;  %v1114_v5 = vadd.f32 %v253_v52, %v232_v47  ;;  %v1120_v11 = vadd.f32 %v253_v52, %v234_v49  ;;  %v317_v47 = vsel %vm316_vm3, %v298_v37, %v315_v39 }
  0xa1   : > { %v1116_v6 = vadd.f32 %v253_v52, %v229_v48 }
  0xa2   : > { %v300_v22 = vperm.slane %v1114_v5, %v1096_v55  ;;  %v302_v29 = vperm.slane %v1120_v11, %v1091_v51 }
  0xa3   : > { %v299_v26 = vperm.slane %v1116_v6, %v1091_v51 }
  0xa5   : > { %v301_v40 = vsel %vm291_vm1, %v300_v22, %v299_v26 }
  0xa6   : > { %v319_v48 = vsel %vm318_vm4, %v301_v40, %v317_v47 }
  0xa7   : > { %v239_v53 = vpop.xlane.xlu1 %238  ;;  %v242_v60 = vpop.xlane.xlu2 %241 }
  0xa8   : > { %v237_v58 = vpop.xlane.xlu0 %236  ;;  %v1134_v27 = vadd.f32 %v253_v52, %v239_v53  ;;  %v1136_v28 = vadd.f32 %v253_v52, %v242_v60 }
  0xa9   : > { %v1122_v12 = vadd.f32 %v253_v52, %v237_v58 }
  0xaa   : > { %v305_v41 = vperm.slane %v1134_v27, %v1091_v51  ;;  %v306_v42 = vperm.slane %v1136_v28, %v1096_v55 }
  0xab   : > { %v303_v30 = vperm.slane %v1122_v12, %v1096_v55 }
  0xac   : > { %v307_v50 = vsel %vm291_vm1, %v306_v42, %v305_v41 }
  0xad   : > { %v304_v44 = vsel %vm291_vm1, %v303_v30, %v302_v29 }
  0xae   : > { %v321_v60 = vsel %vm320_vm5, %v304_v44, %v319_v48 }
  0xaf   : > { %v247_v13 = vpop.xlane.xlu1 %246  ;;  %v249_v36 = vpop.xlane.xlu2 %248  ;;  %v323_v4 = vsel %vm322_vm6, %v307_v50, %v321_v60 }
  0xb0   : > { %v244_v21 = vpop.xlane.xlu0 %243  ;;  %v1142_v32 = vadd.f32 %v253_v52, %v247_v13  ;;  %v1153_v43 = vadd.f32 %v253_v52, %v249_v36 }
  0xb1   : > { %v1144_v35 = vadd.f32 %v253_v52, %v244_v21 }
  0xb2   : > { %v309_v45 = vperm.slane %v1142_v32, %v1096_v55  ;;  %v311_v53 = vperm.slane %v1153_v43, %v1091_v51 }
  0xb3   : > { %v308_v46 = vperm.slane %v1144_v35, %v1091_v51 }
  0xb5   : > { %v310_v62 = vsel %vm291_vm1, %v309_v45, %v308_v46 }
  0xb6   : > { %v325_v13 = vsel %vm324_vm7, %v310_v62, %v323_v4 }
  0xb8   : > { %v252_v49 = vpop.xlane.xlu0 %251 }
  0xb9   : > { %v1165_v58 = vadd.f32 %v253_v52, %v252_v49 }
  0xbb   : > { %v312_v0 = vperm.slane %v1165_v58, %v1096_v55 }
  0xbd   : > { %v313_v10 = vsel %vm291_vm1, %v312_v0, %v311_v53 }
  0xbe   : > { %v327_v14 = vsel %vm326_vm8, %v313_v10, %v325_v13 }
  0xbf   : > { %v330_v52 = vsel %vm329_vm9, %v327_v14, -inf }
  0xc0   : > { %331 = vmax.xlane.f32.xlu1 %v330_v52 }
 0x133   : > { %v1176_v17 = vpop.xlane.xlu1 %331 }
 0x134   : > { %v335_v20 = vperm.slane %v1176_v17, 1  ;;  %v334_v21 = vperm.slane %v1176_v17, 0  ;;  %v336_v30 = vperm.slane %v1176_v17, 2  ;;  %v338_v36 = vperm.slane %v1176_v17, 4 }
 0x135   : > { %v339_v45 = vperm.slane %v1176_v17, 5  ;;  %v341_v60 = vperm.slane %v1176_v17, 7  ;;  %v340_v14 = vperm.slane %v1176_v17, 6 }
 0x136   : > { %v352_v22 = vsub.f32 %v1093_v54, %v335_v20  ;;  %v351_v26 = vsub.f32 %v1100_v57, %v334_v21  ;;  %v350_v29 = vsub.f32 %v1102_v59, %v334_v21  ;;  %v355_v41 = vsub.f32 %v1108_v63, %v336_v30 }
 0x137   : > { %v358_v42 = vsub.f32 %v1120_v11, %v338_v36  ;;  %v353_v54 = vsub.f32 %v1098_v56, %v335_v20  ;;  %v337_v57 = vperm.slane %v1176_v17, 3  ;;  %v361_v11 = vsub.f32 %v1136_v28, %v339_v45 }
 0x138   : > { %v370_v37 = vmul.f32 1.442695, %v352_v22  ;;  %v368_v39 = vmul.f32 1.442695, %v351_v26  ;;  %v366_v40 = vmul.f32 1.442695, %v350_v29  ;;  %v354_v49 = vsub.f32 %v1104_v61, %v336_v30 }
 0x139   : > { %v376_v44 = vmul.f32 1.442695, %v355_v41  ;;  %v382_v59 = vmul.f32 1.442695, %v358_v42  ;;  %v372_v47 = vmul.f32 1.442695, %v353_v54  ;;  %v357_v56 = vsub.f32 %v1114_v5, %v337_v57 }
 0x13a   : > { %840 = vpow2.f32 %v370_v37  ;;  %v388_v53 = vmul.f32 1.442695, %v361_v11  ;;  %v374_v0 = vmul.f32 1.442695, %v354_v49  ;;  %v360_v28 = vsub.f32 %v1134_v27, %v339_v45 }
 0x13b   : > { %842 = vpow2.f32 %v368_v39  ;;  %v380_v50 = vmul.f32 1.442695, %v357_v56  ;;  %v364_v61 = vsub.f32 %v1153_v43, %v341_v60  ;;  %v356_v10 = vsub.f32 %v1116_v6, %v337_v57 }
 0x13c   : > { %844 = vpow2.f32 %v366_v40  ;;  %v386_v13 = vmul.f32 1.442695, %v360_v28  ;;  %v363_v43 = vsub.f32 %v1142_v32, %v340_v14  ;;  %v359_v6 = vsub.f32 %v1122_v12, %v338_v36 }
 0x13d   : > { %846 = vpow2.f32 %v376_v44  ;;  %v394_v52 = vmul.f32 1.442695, %v364_v61  ;;  %v378_v20 = vmul.f32 1.442695, %v356_v10  ;;  %v362_v32 = vsub.f32 %v1144_v35, %v340_v14 }
 0x13e   : > { %848 = vpow2.f32 %v382_v59  ;;  %v392_v17 = vmul.f32 1.442695, %v363_v43  ;;  %v384_v26 = vmul.f32 1.442695, %v359_v6  ;;  %v365_v39 = vsub.f32 %v1165_v58, %v341_v60 }
 0x13f   : > { %850 = vpow2.f32 %v372_v47  ;;  %v390_v12 = vmul.f32 1.442695, %v362_v32 }
 0x140   : > { %v1190_v46 = vpop.eup %840  ;;  %852 = vpow2.f32 %v380_v50  ;;  %v396_v40 = vmul.f32 1.442695, %v365_v39 }
 0x141   : > { %v1192_v48 = vpop.eup %842  ;;  %421 = vperm.xlu1 %838, %v1190_v46   ;;  %854 = vpow2.f32 %v388_v53 }
 0x142   : > { %v1195_v63 = vpop.eup %844  ;;  %418 = vperm.xlu0 %837, %v1192_v48   ;;  %856 = vpow2.f32 %v374_v0 }
 0x143   : > { %415 = vperm.xlu2 %836, %v1195_v63   ;;  %v1203_v62 = vpop.eup %846  ;;  %858 = vpow2.f32 %v386_v13 }
 0x144   : > { %v1205_v4 = vpop.eup %848  ;;  %860 = vpow2.f32 %v394_v52 }
 0x145   : > { %v1208_v5 = vpop.eup %850  ;;  %862 = vpow2.f32 %v378_v20 }
 0x146   : > { %v1216_v15 = vpop.eup %852  ;;  %864 = vpow2.f32 %v392_v17 }
 0x147   : > { %v1218_v21 = vpop.eup %854  ;;  %866 = vpow2.f32 %v384_v26 }
 0x148   : > { %v1221_v27 = vpop.eup %856  ;;  %868 = vpow2.f32 %v390_v12 }
 0x149   : > { %430 = vperm.xlu1 %838, %v1203_v62   ;;  %v1227_v22 = vpop.eup %858  ;;  %870 = vpow2.f32 %v396_v40 }
 0x14a   : > { %439 = vperm.xlu0 %837, %v1205_v4   ;;  %v1229_v29 = vpop.eup %860 }
 0x14b   : > { %424 = vperm.xlu2 %836, %v1208_v5   ;;  %v1232_v30 = vpop.eup %862 }
 0x14c   : > { %v1237_v37 = vpop.eup %864 }
 0x14d   : > { %v1240_v36 = vpop.eup %866 }
 0x14e   : > { %v1244_v41 = vpop.eup %868 }
 0x14f   : > { %v1247_v42 = vpop.eup %870 }
 0x151   : > { %436 = vperm.xlu1 %838, %v1216_v15  }
 0x152   : > { %448 = vperm.xlu0 %837, %v1218_v21  }
 0x153   : > { %427 = vperm.xlu2 %836, %v1221_v27  }
 0x159   : > { %445 = vperm.xlu1 %838, %v1227_v22  }
 0x15a   : > { %457 = vperm.xlu0 %837, %v1229_v29  }
 0x15b   : > { %433 = vperm.xlu2 %836, %v1232_v30  }
 0x161   : > { %454 = vperm.xlu1 %838, %v1237_v37  }
 0x163   : > { %442 = vperm.xlu2 %836, %v1240_v36  }
 0x16b   : > { %451 = vperm.xlu2 %836, %v1244_v41  }
 0x173   : > { %460 = vperm.xlu2 %836, %v1247_v42  }
 0x19d   : > { %v416_v35 = vpop.permute.xlu2 %415 }
 0x19e   : > { %v462_v28 = vperm.slane %v416_v35, %v1091_v51 }
 0x1a5   : > { %v425_v54 = vpop.permute.xlu2 %424 }
 0x1a6   : > { %v466_v61 = vperm.slane %v425_v54, %v1096_v55 }
 0x1ad   : > { %v428_v44 = vpop.permute.xlu2 %427 }
 0x1ae   : > { %v468_v14 = vperm.slane %v428_v44, %v1091_v51 }
 0x1b3   : > { %v422_v57 = vpop.permute.xlu1 %421 }
 0x1b4   : > { %v419_v59 = vpop.permute.xlu0 %418  ;;  %v465_v53 = vperm.slane %v422_v57, %v1091_v51 }
 0x1b5   : > { %v434_v45 = vpop.permute.xlu2 %433  ;;  %v463_v60 = vperm.slane %v419_v59, %v1096_v55 }
 0x1b6   : > { %v467_v52 = vsel %vm291_vm1, %v466_v61, %v465_v53  ;;  %v471_v43 = vperm.slane %v434_v45, %v1091_v51 }
 0x1b7   : > { %v464_v20 = vsel %vm291_vm1, %v463_v60, %v462_v28 }
 0x1b8   : > { %v486_v32 = vsel %vm314_vm2, %v467_v52, %v464_v20 }
 0x1bb   : > { %v431_v47 = vpop.permute.xlu1 %430 }
 0x1bc   : > { %v440_v56 = vpop.permute.xlu0 %439  ;;  %v469_v0 = vperm.slane %v431_v47, %v1096_v55 }
 0x1bd   : > { %v443_v11 = vpop.permute.xlu2 %442  ;;  %v474_v12 = vperm.slane %v440_v56, %v1091_v51 }
 0x1be   : > { %v470_v6 = vsel %vm291_vm1, %v469_v0, %v468_v14  ;;  %v475_v39 = vperm.slane %v443_v11, %v1096_v55 }
 0x1bf   : > { %v487_v54 = vsel %vm316_vm3, %v470_v6, %v486_v32 }
 0x1c0   : > { %v476_v53 = vsel %vm291_vm1, %v475_v39, %v474_v12 }
 0x1c3   : > { %v437_v58 = vpop.permute.xlu1 %436 }
 0x1c4   : > { %v449_v49 = vpop.permute.xlu0 %448  ;;  %v472_v10 = vperm.slane %v437_v58, %v1096_v55 }
 0x1c5   : > { %v452_v50 = vpop.permute.xlu2 %451  ;;  %v478_v44 = vperm.slane %v449_v49, %v1096_v55 }
 0x1c6   : > { %v473_v17 = vsel %vm291_vm1, %v472_v10, %v471_v43  ;;  %v480_v56 = vperm.slane %v452_v50, %v1091_v51 }
 0x1c7   : > { %v488_v57 = vsel %vm318_vm4, %v473_v17, %v487_v54 }
 0x1c8   : > { %v489_v60 = vsel %vm320_vm5, %v476_v53, %v488_v57 }
 0x1cb   : > { %v446_v13 = vpop.permute.xlu1 %445 }
 0x1cc   : > { %v477_v26 = vperm.slane %v446_v13, %v1091_v51  ;;  %v458_v40 = vpop.permute.xlu0 %457 }
 0x1cd   : > { %v461_v35 = vpop.permute.xlu2 %460  ;;  %v483_v45 = vperm.slane %v458_v40, %v1091_v51 }
 0x1ce   : > { %v479_v59 = vsel %vm291_vm1, %v478_v44, %v477_v26  ;;  %v484_v47 = vperm.slane %v461_v35, %v1096_v55 }
 0x1cf   : > { %v490_v49 = vsel %vm322_vm6, %v479_v59, %v489_v60 }
 0x1d0   : > { %v485_v28 = vsel %vm291_vm1, %v484_v47, %v483_v45 }
 0x1d3   : > { %v455_v58 = vpop.permute.xlu1 %454 }
 0x1d4   : > { %v481_v11 = vperm.slane %v455_v58, %v1096_v55 }
 0x1d6   : > { %v482_v0 = vsel %vm291_vm1, %v481_v11, %v480_v56 }
 0x1d7   : > { %v491_v61 = vsel %vm324_vm7, %v482_v0, %v490_v49 }
 0x1d8   : > { %v492_v10 = vsel %vm326_vm8, %v485_v28, %v491_v61 }
 0x1d9   : > { %v494_v13 = vsel %vm329_vm9, %v492_v10, 0.0 }
 0x1da   : > { %495 = vadd.xlane.f32.xlu1 %v494_v13 }
 0x24d   : > { %v496_v14 = vpop.xlane.xlu1 %495 }
 0x24e   : > { %872 = vrcp.f32 %v496_v14 }
 0x254   : > { %v873_v51 = vpop.eup %872 }
 0x255   : > { %v504_v50 = vperm.slane %v873_v51, 5  ;;  %v499_v55 = vperm.slane %v873_v51, 0  ;;  %v500_v6 = vperm.slane %v873_v51, 1  ;;  %v501_v32 = vperm.slane %v873_v51, 2 }
 0x256   : > { %v503_v40 = vperm.slane %v873_v51, 4  ;;  %v505_v35 = vperm.slane %v873_v51, 6  ;;  %v506_v54 = vperm.slane %v873_v51, 7 }
 0x257   : > { %v526_v52 = vmul.f32 %v1218_v21, %v504_v50  ;;  %v516_v20 = vmul.f32 %v1192_v48, %v499_v55  ;;  %v515_v43 = vmul.f32 %v1195_v63, %v499_v55  ;;  %v518_v17 = vmul.f32 %v1208_v5, %v500_v6 }
 0x258   : > { %v517_v26 = vmul.f32 %v1190_v46, %v500_v6  ;;  %v520_v12 = vmul.f32 %v1203_v62, %v501_v32  ;;  %v519_v39 = vmul.f32 %v1221_v27, %v501_v32  ;;  %v502_v48 = vperm.slane %v873_v51, 3 }
 0x259   : > { %588 = vperm.xlu1 %838, %v526_v52   ;;  %538 = vperm.xlu2 %836, %v516_v20   ;;  %v523_v5 = vmul.f32 %v1205_v4, %v503_v40  ;;  %v524_v46 = vmul.f32 %v1240_v36, %v503_v40  ;;  %v528_v62 = vmul.f32 %v1237_v37, %v505_v35 }
 0x25a   : > { %533 = vperm.xlu0 %837, %v515_v43   ;;  %v521_v63 = vmul.f32 %v1232_v30, %v502_v48  ;;  %v522_v21 = vmul.f32 %v1216_v15, %v502_v48  ;;  %v525_v27 = vmul.f32 %v1227_v22, %v504_v50  ;;  %v530_v30 = vmul.f32 %v1247_v42, %v506_v54 }
 0x25b   : > { %v527_v15 = vmul.f32 %v1244_v41, %v505_v35  ;;  %v529_v4 = vmul.f32 %v1229_v29, %v506_v54 }
 0x261   : > { %548 = vperm.xlu2 %836, %v518_v17  }
 0x262   : > { %543 = vperm.xlu0 %837, %v517_v26  }
 0x269   : > { %558 = vperm.xlu2 %836, %v520_v12  }
 0x26a   : > { %553 = vperm.xlu0 %837, %v519_v39  }
 0x271   : > { %563 = vperm.xlu2 %836, %v521_v63  }
 0x272   : > { %568 = vperm.xlu0 %837, %v522_v21  }
 0x279   : > { %573 = vperm.xlu2 %836, %v523_v5  }
 0x27a   : > { %578 = vperm.xlu0 %837, %v524_v46  }
 0x281   : > { %598 = vperm.xlu2 %836, %v528_v62  }
 0x282   : > { %583 = vperm.xlu0 %837, %v525_v27  }
 0x289   : > { %608 = vperm.xlu2 %836, %v530_v30  }
 0x28a   : > { %593 = vperm.xlu0 %837, %v527_v15  }
 0x292   : > { %603 = vperm.xlu0 %837, %v529_v4  }
 0x2b3   : > { %v539_v36 = vpop.permute.xlu2 %538 }
 0x2b4   : > { %v612_v0 = vmul.f32 %v539_v36, %v1038_v9 }
 0x2bb   : > { %v549_v57 = vpop.permute.xlu2 %548 }
 0x2bc   : > { %v614_v56 = vmul.f32 %v549_v57, %v1035_v8 }
 0x2be   : > { %v635_v61 = vsel %vm214_vm0, %v614_v56, 0.0 }
 0x2c3   : > { %v559_v45 = vpop.permute.xlu2 %558 }
 0x2c4   : > { %v616_v41 = vmul.f32 %v559_v45, %v1032_v7 }
 0x2cb   : > { %v564_v47 = vpop.permute.xlu2 %563  ;;  %v589_v11 = vpop.permute.xlu1 %588 }
 0x2cc   : > { %v534_v44 = vpop.permute.xlu0 %533  ;;  %v622_v10 = vmul.f32 %v589_v11, %v1060_v23  ;;  %v617_v7 = vmul.f32 %v564_v47, %v1054_v19 }
 0x2cd   : > { %v611_v28 = vmul.f32 %v534_v44, %v1026_v3 }
 0x2ce   : > { %v667_v55 = vsel %vm214_vm0, %v622_v10, 0.0 }
 0x2d3   : > { %v574_v58 = vpop.permute.xlu2 %573 }
 0x2d4   : > { %v544_v59 = vpop.permute.xlu0 %543  ;;  %v619_v9 = vmul.f32 %v574_v58, %v1051_v18 }
 0x2d5   : > { %v613_v29 = vmul.f32 %v544_v59, %v1023_v2 }
 0x2d7   : > { %v636_v13 = vadd.f32 %v635_v61, %v613_v29 }
 0x2d9   : > { %v637_v20 = vrot.slane %v636_v13, 4 }
 0x2db   : > { %v599_v51 = vpop.permute.xlu2 %598  ;;  %v638_v12 = vadd.f32 %v637_v20, %v636_v13 }
 0x2dc   : > { %v554_v37 = vpop.permute.xlu0 %553  ;;  %v624_v26 = vmul.f32 %v599_v51, %v1074_v31 }
 0x2dd   : > { %v615_v49 = vmul.f32 %v554_v37, %v1020_v1  ;;  %v639_v46 = vrot.slane %v638_v12, 2 }
 0x2df   : > { %v640_v44 = vadd.f32 %v639_v46, %v638_v12 }
 0x2e3   : > { %v609_v35 = vpop.permute.xlu2 %608 }
 0x2e4   : > { %v569_v22 = vpop.permute.xlu0 %568  ;;  %v626_v4 = vmul.f32 %v609_v35, %v1087_v38 }
 0x2e5   : > { %v618_v42 = vmul.f32 %v569_v22, %v1047_v16  ;;  %v643_v16 = vsel %vm214_vm0, %v616_v41, 0.0 }
 0x2e6   : > { %v644_v1 = vadd.f32 %v643_v16, %v615_v49 }
 0x2e7   : > { %v651_v8 = vsel %vm214_vm0, %v618_v42, 0.0  ;;  %v641_v42 = vrot.slane %v640_v44, 1 }
 0x2e8   : > { %v652_v50 = vadd.f32 %v651_v8, %v617_v7  ;;  %v645_v19 = vrot.slane %v644_v1, 4 }
 0x2e9   : > { %v642_v61 = vadd.f32 %v641_v42, %v640_v44 }
 0x2ea   : > { %v653_v17 = vrot.slane %v652_v50, 4  ;;  %v646_v39 = vadd.f32 %v645_v19, %v644_v1 }
 0x2ec   : > { %v579_v53 = vpop.permute.xlu0 %578  ;;  %v654_v21 = vadd.f32 %v653_v17, %v652_v50  ;;  %v647_v54 = vrot.slane %v646_v39, 2 }
 0x2ed   : > { %v620_v60 = vmul.f32 %v579_v53, %v1063_v24  ;;  %v627_v24 = vsel %vm214_vm0, %v612_v0, 0.0  ;;  %v683_v53 = vsel %vm214_vm0, %v626_v4, 0.0 }
 0x2ee   : > { %v628_v3 = vadd.f32 %v627_v24, %v611_v28  ;;  %v655_v15 = vrot.slane %v654_v21, 2  ;;  %v648_v45 = vadd.f32 %v647_v54, %v646_v39 }
 0x2ef   : > { %v659_v2 = vsel %vm214_vm0, %v620_v60, 0.0 }
 0x2f0   : > { %v660_v52 = vadd.f32 %v659_v2, %v619_v9  ;;  %v629_v6 = vrot.slane %v628_v3, 4  ;;  %v656_v47 = vadd.f32 %v655_v15, %v654_v21  ;;  %v649_v38 = vrot.slane %v648_v45, 1 }
 0x2f2   : > { %v661_v32 = vrot.slane %v660_v52, 4  ;;  %v630_v63 = vadd.f32 %v629_v6, %v628_v3  ;;  %v657_v0 = vrot.slane %v656_v47, 1 }
 0x2f4   : > { %v584_v14 = vpop.permute.xlu0 %583  ;;  %v662_v5 = vadd.f32 %v661_v32, %v660_v52  ;;  %v631_v30 = vrot.slane %v630_v63, 2  ;;  %v658_v13 = vadd.f32 %v657_v0, %v656_v47 }
 0x2f5   : > { %v621_v23 = vmul.f32 %v584_v14, %v1066_v25  ;;  %v675_v25 = vsel %vm214_vm0, %v624_v26, 0.0 }
 0x2f6   : > { %v663_v36 = vrot.slane %v662_v5, 2  ;;  %v632_v37 = vadd.f32 %v631_v30, %v630_v63 }
 0x2f7   : > { %v668_v43 = vadd.f32 %v667_v55, %v621_v23 }
 0x2f8   : > { %v664_v56 = vadd.f32 %v663_v36, %v662_v5  ;;  %v633_v60 = vrot.slane %v632_v37, 1 }
 0x2f9   : > { %v669_v18 = vrot.slane %v668_v43, 4 }
 0x2fa   : > { %v665_v28 = vrot.slane %v664_v56, 1  ;;  %v634_v7 = vadd.f32 %v633_v60, %v632_v37 }
 0x2fb   : > { %v670_v62 = vadd.f32 %v669_v18, %v668_v43 }
 0x2fc   : > { %v594_v48 = vpop.permute.xlu0 %593  ;;  %v666_v24 = vadd.f32 %v665_v28, %v664_v56  ;;  %v699_v9 = vsel %vm314_vm2, %v642_v61, %v634_v7 }
 0x2fd   : > { %v623_v40 = vmul.f32 %v594_v48, %v1081_v34  ;;  %v671_v57 = vrot.slane %v670_v62, 2 }
 0x2ff   : > { %v676_v27 = vadd.f32 %v675_v25, %v623_v40  ;;  %v672_v41 = vadd.f32 %v671_v57, %v670_v62 }
 0x301   : > { %v677_v31 = vrot.slane %v676_v27, 4  ;;  %v673_v10 = vrot.slane %v672_v41, 1 }
 0x303   : > { %v678_v59 = vadd.f32 %v677_v31, %v676_v27  ;;  %v674_v1 = vadd.f32 %v673_v10, %v672_v41 }
 0x304   : > { %v604_v34 = vpop.permute.xlu0 %603 }
 0x305   : > { %v679_v22 = vrot.slane %v678_v59, 2  ;;  %v625_v58 = vmul.f32 %v604_v34, %v1078_v33  ;;  %v650_v33 = vadd.f32 %v649_v38, %v648_v45 }
 0x307   : > { %v684_v11 = vadd.f32 %v683_v53, %v625_v58  ;;  %v680_v29 = vadd.f32 %v679_v22, %v678_v59  ;;  %v700_v3 = vsel %vm316_vm3, %v650_v33, %v699_v9 }
 0x308   : > { %v701_v23 = vsel %vm318_vm4, %v658_v13, %v700_v3 }
 0x309   : > { %v685_v49 = vrot.slane %v684_v11, 4  ;;  %v681_v16 = vrot.slane %v680_v29, 1  ;;  %v702_v55 = vsel %vm320_vm5, %v666_v24, %v701_v23 }
 0x30a   : > { %v703_v20 = vsel %vm322_vm6, %v674_v1, %v702_v55 }
 0x30b   : > { %v686_v8 = vadd.f32 %v685_v49, %v684_v11  ;;  %v682_v51 = vadd.f32 %v681_v16, %v680_v29 }
 0x30d   : > { %v687_v2 = vrot.slane %v686_v8, 2  ;;  %v704_v43 = vsel %vm324_vm7, %v682_v51, %v703_v20 }
 0x30f   : > { %v688_v14 = vadd.f32 %v687_v2, %v686_v8 }
 0x311   : > { %v689_v50 = vrot.slane %v688_v14, 1 }
 0x313   : > { %v690_v52 = vadd.f32 %v689_v50, %v688_v14 }
 0x315   : > { %v705_v19 = vsel %vm326_vm8, %v690_v52, %v704_v43 }
 0x316   : > { %707 = vst [vmem:[%s167_s12] sm:$0xff] %v705_v19 }
 0x317   : > { %901 = shalt.err (!%p898_p3)
}
 0x318   : > { %796 = dma.vmem_to_hbm [thread:$0]  (%p997_p5), %s722_s13, 128, %s724_s2, %s709_s18  }
 0x319 PF: > { %p802_p4 = scmp.ge.s32.totalorder %s936_s17, 2  ;;  %s735_s30 = sand.u32 1, %s924_s14  }
 0x31a   : > { %s736_s4 = scalar_lea.sflag [#allocation4], %s735_s30 }
 0x31b   : > { %p799_p7 = pnand %p802_p4, %p1001_p6 }
 0x31d   : > { %p800_p8 = pneg %p799_p7 }
 0x31f   : > { %919 = dma.done.wait (%p800_p8), %s736_s4, 128  }
 0x320   : > { %921 = vsyncadd (%p800_p8), %s736_s4, 4294967168  ;;  %p14_p9 = scmp.ge.s32.totalorder %s985_s19, 4   ;;  %s1371_s14 = smov %s928_s15 }
 0x321   : > { %s1372_s15 = smov %s932_s16  ;;  %s1373_s16 = smov %s995_s22 }
 0x322   : > { %s1374_s17 = smov %s985_s19  ;;  %16 = sbr.rel (!%p14_p9) target bundleno = 5 (0x5), region = 67 }
 0x327   :  { %742 = vsyncpa [#allocation4], 1 }
 0x328   :  { %744 = vsyncpa [#allocation4 + $0x1], 1 }

</bundles_post_ra>
